<compile_context>
chip_gen: v7x
topology: tpu7x:2x2x1
jax: 0.10.0
libtpu: 0.0.40
codegen_flags: <defaults>
</compile_context>

<pallas_src>
import functools

import jax
import jax.numpy as jnp
from jax import lax
from jax.experimental import pallas as pl
from jax.experimental.pallas import tpu as pltpu


def _mace_charge_kernel(pos1_ref, cqsr_ref, local_ref, posT_ref, rhs_ref,
                        atoms_ref, misc_ref, *, inv_r2):
    f32 = jnp.float32
    pos1 = pos1_ref[...]                     # (TM, 4)   [x | y | z | 1] (row tile)
    pos = pos1[:, 0:3]
    cqsr = cqsr_ref[...]                     # (TM, 4)   [c | q0 | s | ro]
    local = local_ref[...]                   # (TM, 1)   local_or_ghost mask
    posT = posT_ref[...]                     # (3, N)    column-side coordinates (resident)
    rhs = rhs_ref[...]                       # (N, 16)   [c*pos1 | lc*pos1 | s*pos1 | pos1]

    c = cqsr[:, 0:1]
    q0 = cqsr[:, 1:2]
    s = cqsr[:, 2:3]
    ro = cqsr[:, 3:4]
    lc = local * c

    # --- pairwise distances from explicit coordinate differences -------------
    # Robust for far-from-origin coordinates (no Gram cancellation); the
    # diagonal is exactly 0, so unmasked phi has an exactly-1 diagonal which is
    # removed below by a single (TM,16) subtraction (no iota mask needed).
    dx = pos[:, 0:1] - posT[0:1, :]
    d2 = dx * dx
    dy = pos[:, 1:2] - posT[1:2, :]
    d2 = d2 + dy * dy
    dz = pos[:, 2:3] - posT[2:3, :]
    d2 = d2 + dz * dz
    phi = jnp.exp(d2 * f32(-inv_r2))          # (TM, N), unmasked

    # --- single fused MXU pass over the pair dimension -----------------------
    phiR = jnp.dot(phi, rhs, preferred_element_type=f32)               # (TM, 16)
    rhs_row = jnp.concatenate([c * pos1, lc * pos1, s * pos1, pos1], axis=1)
    phiR = phiR - rhs_row                     # remove the i == j contribution

    Pc = phiR[:, 0:4]                         # phi_masked @ (c  * pos1)
    Plc = phiR[:, 4:8]                        # phi_masked @ (lc * pos1)
    Ps = phiR[:, 8:12]                        # phi_masked @ (s  * pos1)
    Pp = phiR[:, 12:16]                       # phi_masked @ pos1

    node_e = ro + 0.5 * c * Pc[:, 3:4]        # (TM, 1)
    charges = q0 + Ps[:, 3:4]                 # (TM, 1)

    # forces: A_kj = c_k c_j (l_k + l_j) phi_kj / r^2
    #         A @ [x|1] = (c / r^2) * (l * Pc + Plc);  F = rowA*x - A@x
    Ap = (f32(inv_r2) * c) * (local * Pc + Plc)                        # (TM, 4)
    forces = Ap[:, 3:4] * pos - Ap[:, 0:3]                             # (TM, 3)

    # total-charge gradient: B_kj = -2 phi_kj (s_k + s_j) / r^2
    Bp = f32(-2.0 * inv_r2) * (s * Pp + Ps)                            # (TM, 4)
    qgrad = Bp[:, 3:4] * pos - Bp[:, 0:3]                              # (TM, 3)

    # per-tile reductions: local energy, total charge, virial = pos^T @ forces
    te = jnp.sum(node_e * local, keepdims=True)                        # (1, 1)
    tq = jnp.sum(charges, keepdims=True)                               # (1, 1)
    vir = lax.dot_general(pos, forces, (((0,), (0,)), ((), ())),
                          preferred_element_type=f32)                 # (3, 3)

    # lane-dense per-atom slab: rows = [node_e, charges, Fx, Fy, Fz, Qx, Qy, Qz]
    slab = jnp.concatenate([node_e, charges, forces, qgrad], axis=1)   # (TM, 8)
    atoms_ref[...] = jnp.transpose(slab)                               # (8, TM)

    # per-tile partials (virial / te / tq) packed into one padded (8,128) tile
    vir_rows = jnp.concatenate([vir, jnp.zeros((3, 125), f32)], axis=1)
    scal_row = jnp.concatenate([te, tq, jnp.zeros((1, 126), f32)], axis=1)
    misc = jnp.concatenate([vir_rows, scal_row, jnp.zeros((4, 128), f32)], axis=0)
    misc_ref[...] = jnp.reshape(misc, (1, 8, 128))


def _choose_tiling(n):
    """Returns (padded_n, row_tile): single tile for small systems, 256/128-row
    tiles (pair dim streamed per tile, VMEM = O(TM*N)) for large ones."""
    if n <= 512:
        n_pad = max(((n + 7) // 8) * 8, 8)
        return n_pad, n_pad
    tm = 256 if n <= 8192 else 128
    n_pad = ((n + tm - 1) // tm) * tm
    return n_pad, tm


def lammps_mace_charge_forward(data, local_or_ghost, params, r_max,
                               compute_virials=False,
                               compute_total_charge_gradients=False):
    """JAX/Pallas equivalent of LAMMPS_MACE_CHARGE.forward (surrogate model)."""
    num_graphs = data["ptr"].shape[0] - 1
    assert num_graphs == 1
    positions = data["positions"].astype(jnp.float32)        # (N, 3)
    node_attrs = data["node_attrs"].astype(jnp.float32)      # (N, Z)
    N = positions.shape[0]
    local = local_or_ghost.astype(jnp.float32).reshape(N, 1)
    inv_r2 = float(1.0 / (float(r_max) * float(r_max)))

    # fused readout weights (Z, 4) -> columns [c | q0 | s | ro]; the one-hot
    # embedding matmul stays in XLA (kernel never sees node_attrs).
    w4 = jnp.dot(
        params["w_embed"].astype(jnp.float32),
        jnp.concatenate([params["w_c"], params["w_q"],
                         params["w_s"], params["w_readout"]],
                        axis=1).astype(jnp.float32))
    cqsr = jnp.dot(node_attrs, w4)                            # (N, 4)

    # center positions (physics is translation invariant; avoids d2 cancellation)
    pos_c = positions - jnp.mean(positions, axis=0, keepdims=True)

    n_pad, tm = _choose_tiling(N)
    g = n_pad // tm
    pad = n_pad - N
    if pad:
        # padded atoms: zero weights/mask, positions far away so phi underflows
        # to exactly 0 against every real atom.
        pos_c = jnp.concatenate(
            [pos_c, jnp.full((pad, 3), 1.0e6, jnp.float32)], axis=0)
        cqsr = jnp.concatenate([cqsr, jnp.zeros((pad, 4), jnp.float32)], axis=0)
        local_p = jnp.concatenate([local, jnp.zeros((pad, 1), jnp.float32)], axis=0)
    else:
        local_p = local

    pos1 = jnp.concatenate([pos_c, jnp.ones((n_pad, 1), jnp.float32)], axis=1)
    posT = jnp.transpose(pos_c)                               # (3, n_pad)
    c_col = cqsr[:, 0:1]
    s_col = cqsr[:, 2:3]
    lc_col = local_p * c_col
    rhs = jnp.concatenate(
        [c_col * pos1, lc_col * pos1, s_col * pos1, pos1], axis=1)   # (n_pad, 16)

    out_shapes = (
        jax.ShapeDtypeStruct((8, n_pad), jnp.float32),   # per-atom slab (lane-dense)
        jax.ShapeDtypeStruct((g, 8, 128), jnp.float32),  # per-tile vir/te/tq partials
    )
    in_specs = [
        pl.BlockSpec((tm, 4), lambda i: (i, 0)),          # pos1 row tile
        pl.BlockSpec((tm, 4), lambda i: (i, 0)),          # cqsr row tile
        pl.BlockSpec((tm, 1), lambda i: (i, 0)),          # local row tile
        pl.BlockSpec((3, n_pad), lambda i: (0, 0)),       # posT (resident)
        pl.BlockSpec((n_pad, 16), lambda i: (0, 0)),      # rhs  (resident)
    ]
    out_specs = (
        pl.BlockSpec((8, tm), lambda i: (0, i)),
        pl.BlockSpec((1, 8, 128), lambda i: (i, 0, 0)),
    )

    cost = pl.CostEstimate(
        flops=int(n_pad * n_pad * (8 + 2 * 16) + 80 * n_pad),
        transcendentals=int(n_pad * n_pad),
        bytes_accessed=int(4 * (n_pad * (4 + 4 + 1 + 3 + 16 + 8) + g * 8 * 128)),
    )
    vmem_est = 16 * tm * n_pad + 320 * n_pad + 1024 * tm + (2 << 20)
    cparams = pltpu.CompilerParams(
        dimension_semantics=("parallel",),
        vmem_limit_bytes=int(min(max(vmem_est, 32 * 1024 * 1024),
                                 64 * 1024 * 1024)),
    )

    kernel = functools.partial(_mace_charge_kernel, inv_r2=inv_r2)
    atoms, misc = pl.pallas_call(
        kernel,
        out_shape=out_shapes,
        grid=(g,),
        in_specs=in_specs,
        out_specs=out_specs,
        compiler_params=cparams,
        cost_estimate=cost,
    )(pos1, cqsr, local_p, posT, rhs)

    node_energy = atoms[0, :N]
    charges_out = atoms[1, :N]
    forces = jnp.transpose(atoms[2:5, :N])
    qgrad = jnp.transpose(atoms[5:8, :N])
    m = jnp.sum(misc, axis=0)                                 # (8, 128)
    total_energy_local = m[3:4, 0]        # scatter_sum over batch (num_graphs == 1)
    total_charge = m[3, 1]

    if compute_virials:
        virials = m[0:3, 0:3].reshape(1, 3, 3)   # matches displacement (num_graphs,3,3)
    else:
        virials = jnp.zeros_like(data["cell"])

    if compute_total_charge_gradients:
        total_charge_gradients = qgrad
    else:
        total_charge_gradients = jnp.zeros_like(positions)

    # TODO(synk): the torch module optionally imports a user-defined `charge_cv_expr`
    # module at runtime; we take the ImportError branch (charge_cv = [0.0], grads = 0).
    charge_cv = jnp.zeros((1,), dtype=jnp.float32)   # torch uses float64; TPU kernel is f32
    charge_cv_gradients = jnp.zeros_like(positions)

    return {
        "total_energy_local": total_energy_local,
        "node_energy": node_energy,
        "forces": forces,
        "virials": virials,
        "total_charge": total_charge,
        "total_charge_gradients": total_charge_gradients,
        "charges": charges_out,
        "charge_cv": charge_cv,
        "charge_cv_gradients": charge_cv_gradients,
    }


def _reference(positions, node_attrs, local, params, r_max):
    """Pure-JAX reference (uses jax.grad instead of analytic gradients)."""
    W, wc, wq, ws, wro = (params["w_embed"], params["w_c"], params["w_q"],
                          params["w_s"], params["w_readout"])
    inv_r2 = 1.0 / (r_max * r_max)
    N = positions.shape[0]

    def feats(pos):
        h = node_attrs @ W
        c, q0, s, ro = h @ wc, h @ wq, h @ ws, h @ wro
        diff = pos[:, None, :] - pos[None, :, :]
        d2 = jnp.sum(diff * diff, axis=-1)
        phi = jnp.exp(-d2 * inv_r2) * (1.0 - jnp.eye(N))
        node_e = ro + 0.5 * c * (phi @ c)
        charges = q0 + phi @ s
        return node_e, charges

    def e_local(pos, eps):
        p = pos + pos @ eps
        node_e, _ = feats(p)
        return jnp.sum(node_e * local)

    def totq(pos):
        _, ch = feats(pos)
        return jnp.sum(ch)

    zeps = jnp.zeros((3, 3), jnp.float32)
    node_e, charges = feats(positions)
    forces = -jax.grad(e_local, argnums=0)(positions, zeps)
    virials = -jax.grad(e_local, argnums=1)(positions, zeps)
    qgrad = jax.grad(totq)(positions)
    return node_e.reshape(N), charges.reshape(N), forces, qgrad, \
        jnp.sum(node_e * local), jnp.sum(charges), virials


if __name__ == "__main__":
    key = jax.random.PRNGKey(0)
    N, Z, H = 16, 4, 32          # atoms, chemical elements, hidden channels
    r_max = 5.0

    k_pos, k_sp, k_e, k_c, k_q, k_s, k_r = jax.random.split(key, 7)
    positions = jax.random.uniform(k_pos, (N, 3), jnp.float32, 0.0, 4.0)
    species = jax.random.randint(k_sp, (N,), 0, Z)
    node_attrs = jax.nn.one_hot(species, Z, dtype=jnp.float32)
    local_or_ghost = jnp.concatenate(
        [jnp.ones((N - 4,), jnp.float32), jnp.zeros((4,), jnp.float32)])

    params = {
        "w_embed": 0.1 * jax.random.normal(k_e, (Z, H), jnp.float32),
        "w_c": 0.1 * jax.random.normal(k_c, (H, 1), jnp.float32),
        "w_q": 0.1 * jax.random.normal(k_q, (H, 1), jnp.float32),
        "w_s": 0.1 * jax.random.normal(k_s, (H, 1), jnp.float32),
        "w_readout": 0.1 * jax.random.normal(k_r, (H, 1), jnp.float32),
    }

    data = {
        "positions": positions,
        "node_attrs": node_attrs,
        "batch": jnp.zeros((N,), jnp.int32),
        "ptr": jnp.array([0, N], jnp.int32),
        "cell": 4.0 * jnp.eye(3, dtype=jnp.float32),
        "head": jnp.array([0], jnp.int32),
    }

    out = lammps_mace_charge_forward(
        data, local_or_ghost, params, r_max,
        compute_virials=True, compute_total_charge_gradients=True)
    out = jax.block_until_ready(out)

    # correctness check against pure-JAX autodiff reference
    local_col = local_or_ghost.reshape(N, 1)
    ne_r, ch_r, f_r, qg_r, te_r, tq_r, vir_r = _reference(
        positions, node_attrs, local_col, params, r_max)

    def ok(a, b):
        return bool(jnp.allclose(a, b, rtol=2e-3, atol=2e-3))

    assert ok(out["node_energy"], ne_r)
    assert ok(out["charges"], ch_r)
    assert ok(out["forces"], f_r)
    assert ok(out["total_charge_gradients"], qg_r)
    assert ok(out["total_energy_local"][0], te_r)
    assert ok(out["total_charge"], tq_r)
    assert ok(out["virials"].reshape(3, 3), vir_r)

    print("KERNEL_OK")
</pallas_src>

<mosaic_0001>
module attributes {stable_mosaic.version = 11 : i64} {
  func.func @_mace_charge_kernel(%arg0: i32, %arg1: memref<16x4xf32, #tpu.memory_space<vmem>>, %arg2: memref<16x4xf32, #tpu.memory_space<vmem>>, %arg3: memref<16x1xf32, #tpu.memory_space<vmem>>, %arg4: memref<3x16xf32, #tpu.memory_space<vmem>>, %arg5: memref<16x16xf32, #tpu.memory_space<vmem>>, %arg6: memref<8x16xf32, #tpu.memory_space<vmem>>, %arg7: memref<1x8x128xf32, #tpu.memory_space<vmem>>) attributes {dimension_semantics = [#tpu.dimension_semantics<parallel>], iteration_bounds = array<i64: 1>, scalar_prefetch = 0 : i64, scratch_operands = 0 : i64, tpu.core_type = #tpu.core_type<tc>, window_params = [{transform_indices = @transform_0, window_bounds = array<i64: 16, 4>}, {transform_indices = @transform_1, window_bounds = array<i64: 16, 4>}, {transform_indices = @transform_2, window_bounds = array<i64: 16, 1>}, {pipeline_mode = #tpu.pipeline_mode<synchronous>, transform_indices = @transform_3, window_bounds = array<i64: 3, 16>}, {pipeline_mode = #tpu.pipeline_mode<synchronous>, transform_indices = @transform_4, window_bounds = array<i64: 16, 16>}, {transform_indices = @transform_5, window_bounds = array<i64: 8, 16>}, {transform_indices = @transform_6, window_bounds = array<i64: 1, 8, 128>}]} {
    %c0 = arith.constant 0 : index
    %c0_0 = arith.constant 0 : index
    %0 = vector.load %arg1[%c0, %c0_0] : memref<16x4xf32, #tpu.memory_space<vmem>>, vector<16x4xf32>
    %1 = vector.extract_strided_slice %0 {offsets = [0, 0], sizes = [16, 3], strides = [1, 1]} : vector<16x4xf32> to vector<16x3xf32>
    %c0_1 = arith.constant 0 : index
    %c0_2 = arith.constant 0 : index
    %2 = vector.load %arg2[%c0_1, %c0_2] : memref<16x4xf32, #tpu.memory_space<vmem>>, vector<16x4xf32>
    %c0_3 = arith.constant 0 : index
    %c0_4 = arith.constant 0 : index
    %3 = vector.load %arg3[%c0_3, %c0_4] : memref<16x1xf32, #tpu.memory_space<vmem>>, vector<16x1xf32>
    %c0_5 = arith.constant 0 : index
    %c0_6 = arith.constant 0 : index
    %4 = vector.load %arg4[%c0_5, %c0_6] : memref<3x16xf32, #tpu.memory_space<vmem>>, vector<3x16xf32>
    %c0_7 = arith.constant 0 : index
    %c0_8 = arith.constant 0 : index
    %5 = vector.load %arg5[%c0_7, %c0_8] : memref<16x16xf32, #tpu.memory_space<vmem>>, vector<16x16xf32>
    %6 = vector.extract_strided_slice %2 {offsets = [0, 0], sizes = [16, 1], strides = [1, 1]} : vector<16x4xf32> to vector<16x1xf32>
    %7 = vector.extract_strided_slice %2 {offsets = [0, 1], sizes = [16, 1], strides = [1, 1]} : vector<16x4xf32> to vector<16x1xf32>
    %8 = vector.extract_strided_slice %2 {offsets = [0, 2], sizes = [16, 1], strides = [1, 1]} : vector<16x4xf32> to vector<16x1xf32>
    %9 = vector.extract_strided_slice %2 {offsets = [0, 3], sizes = [16, 1], strides = [1, 1]} : vector<16x4xf32> to vector<16x1xf32>
    %10 = arith.mulf %3, %6 : vector<16x1xf32>
    %11 = vector.extract_strided_slice %1 {offsets = [0, 0], sizes = [16, 1], strides = [1, 1]} : vector<16x3xf32> to vector<16x1xf32>
    %12 = vector.extract_strided_slice %4 {offsets = [0, 0], sizes = [1, 16], strides = [1, 1]} : vector<3x16xf32> to vector<1x16xf32>
    %13 = vector.broadcast %11 : vector<16x1xf32> to vector<16x16xf32>
    %14 = vector.broadcast %12 : vector<1x16xf32> to vector<16x16xf32>
    %15 = arith.subf %13, %14 : vector<16x16xf32>
    %16 = arith.mulf %15, %15 : vector<16x16xf32>
    %17 = vector.extract_strided_slice %1 {offsets = [0, 1], sizes = [16, 1], strides = [1, 1]} : vector<16x3xf32> to vector<16x1xf32>
    %18 = vector.extract_strided_slice %4 {offsets = [1, 0], sizes = [1, 16], strides = [1, 1]} : vector<3x16xf32> to vector<1x16xf32>
    %19 = vector.broadcast %17 : vector<16x1xf32> to vector<16x16xf32>
    %20 = vector.broadcast %18 : vector<1x16xf32> to vector<16x16xf32>
    %21 = arith.subf %19, %20 : vector<16x16xf32>
    %22 = arith.mulf %21, %21 : vector<16x16xf32>
    %23 = arith.addf %16, %22 : vector<16x16xf32>
    %24 = vector.extract_strided_slice %1 {offsets = [0, 2], sizes = [16, 1], strides = [1, 1]} : vector<16x3xf32> to vector<16x1xf32>
    %25 = vector.extract_strided_slice %4 {offsets = [2, 0], sizes = [1, 16], strides = [1, 1]} : vector<3x16xf32> to vector<1x16xf32>
    %26 = vector.broadcast %24 : vector<16x1xf32> to vector<16x16xf32>
    %27 = vector.broadcast %25 : vector<1x16xf32> to vector<16x16xf32>
    %28 = arith.subf %26, %27 : vector<16x16xf32>
    %29 = arith.mulf %28, %28 : vector<16x16xf32>
    %30 = arith.addf %23, %29 : vector<16x16xf32>
    %cst = arith.constant -4.000000e-02 : f32
    %31 = vector.broadcast %cst : f32 to vector<16x16xf32>
    %32 = arith.mulf %30, %31 : vector<16x16xf32>
    %33 = math.exp %32 : vector<16x16xf32>
    %cst_9 = arith.constant dense<0.000000e+00> : vector<16x16xf32>
    %34 = tpu.matmul %33, %5, %cst_9 {dimension_numbers = #tpu.dot_dimension_numbers<[1], [0], [0], [1], [0, 0, 1, 1], [], []>} : vector<16x16xf32>, vector<16x16xf32>, vector<16x16xf32> -> vector<16x16xf32>
    %35 = vector.broadcast %6 : vector<16x1xf32> to vector<16x4xf32>
    %36 = arith.mulf %35, %0 : vector<16x4xf32>
    %37 = vector.broadcast %10 : vector<16x1xf32> to vector<16x4xf32>
    %38 = arith.mulf %37, %0 : vector<16x4xf32>
    %39 = vector.broadcast %8 : vector<16x1xf32> to vector<16x4xf32>
    %40 = arith.mulf %39, %0 : vector<16x4xf32>
    %41 = tpu.concatenate %36, %38, %40, %0 in 1 : vector<16x4xf32>, vector<16x4xf32>, vector<16x4xf32>, vector<16x4xf32> -> vector<16x16xf32>
    %42 = arith.subf %34, %41 : vector<16x16xf32>
    %43 = vector.extract_strided_slice %42 {offsets = [0, 0], sizes = [16, 4], strides = [1, 1]} : vector<16x16xf32> to vector<16x4xf32>
    %44 = vector.extract_strided_slice %42 {offsets = [0, 4], sizes = [16, 4], strides = [1, 1]} : vector<16x16xf32> to vector<16x4xf32>
    %45 = vector.extract_strided_slice %42 {offsets = [0, 8], sizes = [16, 4], strides = [1, 1]} : vector<16x16xf32> to vector<16x4xf32>
    %46 = vector.extract_strided_slice %42 {offsets = [0, 12], sizes = [16, 4], strides = [1, 1]} : vector<16x16xf32> to vector<16x4xf32>
    %cst_10 = arith.constant 5.000000e-01 : f32
    %47 = vector.broadcast %cst_10 : f32 to vector<16x1xf32>
    %48 = arith.mulf %47, %6 : vector<16x1xf32>
    %49 = vector.extract_strided_slice %43 {offsets = [0, 3], sizes = [16, 1], strides = [1, 1]} : vector<16x4xf32> to vector<16x1xf32>
    %50 = arith.mulf %48, %49 : vector<16x1xf32>
    %51 = arith.addf %9, %50 : vector<16x1xf32>
    %52 = vector.extract_strided_slice %45 {offsets = [0, 3], sizes = [16, 1], strides = [1, 1]} : vector<16x4xf32> to vector<16x1xf32>
    %53 = arith.addf %7, %52 : vector<16x1xf32>
    %cst_11 = arith.constant 4.000000e-02 : f32
    %54 = vector.broadcast %cst_11 : f32 to vector<16x1xf32>
    %55 = arith.mulf %54, %6 : vector<16x1xf32>
    %56 = vector.broadcast %3 : vector<16x1xf32> to vector<16x4xf32>
    %57 = arith.mulf %56, %43 : vector<16x4xf32>
    %58 = arith.addf %57, %44 : vector<16x4xf32>
    %59 = vector.broadcast %55 : vector<16x1xf32> to vector<16x4xf32>
    %60 = arith.mulf %59, %58 : vector<16x4xf32>
    %61 = vector.extract_strided_slice %60 {offsets = [0, 3], sizes = [16, 1], strides = [1, 1]} : vector<16x4xf32> to vector<16x1xf32>
    %62 = vector.broadcast %61 : vector<16x1xf32> to vector<16x3xf32>
    %63 = arith.mulf %62, %1 : vector<16x3xf32>
    %64 = vector.extract_strided_slice %60 {offsets = [0, 0], sizes = [16, 3], strides = [1, 1]} : vector<16x4xf32> to vector<16x3xf32>
    %65 = arith.subf %63, %64 : vector<16x3xf32>
    %66 = vector.broadcast %8 : vector<16x1xf32> to vector<16x4xf32>
    %67 = arith.mulf %66, %46 : vector<16x4xf32>
    %68 = arith.addf %67, %45 : vector<16x4xf32>
    %cst_12 = arith.constant -8.000000e-02 : f32
    %69 = vector.broadcast %cst_12 : f32 to vector<16x4xf32>
    %70 = arith.mulf %69, %68 : vector<16x4xf32>
    %71 = vector.extract_strided_slice %70 {offsets = [0, 3], sizes = [16, 1], strides = [1, 1]} : vector<16x4xf32> to vector<16x1xf32>
    %72 = vector.broadcast %71 : vector<16x1xf32> to vector<16x3xf32>
    %73 = arith.mulf %72, %1 : vector<16x3xf32>
    %74 = vector.extract_strided_slice %70 {offsets = [0, 0], sizes = [16, 3], strides = [1, 1]} : vector<16x4xf32> to vector<16x3xf32>
    %75 = arith.subf %73, %74 : vector<16x3xf32>
    %76 = arith.mulf %51, %3 : vector<16x1xf32>
    %77 = vector.shape_cast %76 : vector<16x1xf32> to vector<1x16x1xf32>
    %cst_13 = arith.constant dense<0.000000e+00> : vector<1xf32>
    %78 = vector.multi_reduction <add>, %77, %cst_13 [1, 2] : vector<1x16x1xf32> to vector<1xf32>
    %79 = vector.shape_cast %78 : vector<1xf32> to vector<1x1x1xf32>
    %80 = vector.extract %79[0, 0, 0] : f32 from vector<1x1x1xf32>
    %81 = vector.broadcast %80 : f32 to vector<1x1xf32>
    %82 = vector.shape_cast %53 : vector<16x1xf32> to vector<1x16x1xf32>
    %cst_14 = arith.constant dense<0.000000e+00> : vector<1xf32>
    %83 = vector.multi_reduction <add>, %82, %cst_14 [1, 2] : vector<1x16x1xf32> to vector<1xf32>
    %84 = vector.shape_cast %83 : vector<1xf32> to vector<1x1x1xf32>
    %85 = vector.extract %84[0, 0, 0] : f32 from vector<1x1x1xf32>
    %86 = vector.broadcast %85 : f32 to vector<1x1xf32>
    %cst_15 = arith.constant dense<0.000000e+00> : vector<3x3xf32>
    %87 = tpu.matmul %1, %65, %cst_15 {dimension_numbers = #tpu.dot_dimension_numbers<[0], [0], [1], [1], [0, 1, 1, 1], [], []>} : vector<16x3xf32>, vector<16x3xf32>, vector<3x3xf32> -> vector<3x3xf32>
    %88 = tpu.concatenate %51, %53, %65, %75 in 1 : vector<16x1xf32>, vector<16x1xf32>, vector<16x3xf32>, vector<16x3xf32> -> vector<16x8xf32>
    %89 = tpu.transpose %88, [1, 0] : vector<16x8xf32> -> vector<8x16xf32>
    %c0_16 = arith.constant 0 : index
    %c0_17 = arith.constant 0 : index
    %90 = vector.load %arg6[%c0_16, %c0_17] : memref<8x16xf32, #tpu.memory_space<vmem>>, vector<8x16xf32>
    tpu.vector_store %arg6[%c0_16, %c0_17], %89 {strides = array<i32>} : memref<8x16xf32, #tpu.memory_space<vmem>>, vector<8x16xf32>,
    %cst_18 = arith.constant 0.000000e+00 : f32
    %91 = vector.broadcast %cst_18 : f32 to vector<3x125xf32>
    %92 = tpu.concatenate %87, %91 in 1 : vector<3x3xf32>, vector<3x125xf32> -> vector<3x128xf32>
    %cst_19 = arith.constant 0.000000e+00 : f32
    %93 = vector.broadcast %cst_19 : f32 to vector<1x126xf32>
    %94 = tpu.concatenate %81, %86, %93 in 1 : vector<1x1xf32>, vector<1x1xf32>, vector<1x126xf32> -> vector<1x128xf32>
    %cst_20 = arith.constant 0.000000e+00 : f32
    %95 = vector.broadcast %cst_20 : f32 to vector<4x128xf32>
    %96 = tpu.concatenate %92, %94, %95 in 0 : vector<3x128xf32>, vector<1x128xf32>, vector<4x128xf32> -> vector<8x128xf32>
    %97 = vector.shape_cast %96 : vector<8x128xf32> to vector<1x8x128xf32>
    %c0_21 = arith.constant 0 : index
    %c0_22 = arith.constant 0 : index
    %c0_23 = arith.constant 0 : index
    %98 = vector.load %arg7[%c0_21, %c0_22, %c0_23] : memref<1x8x128xf32, #tpu.memory_space<vmem>>, vector<1x8x128xf32>
    tpu.vector_store %arg7[%c0_21, %c0_22, %c0_23], %97 {strides = array<i32>} : memref<1x8x128xf32, #tpu.memory_space<vmem>>, vector<1x8x128xf32>,
    return
  }
  func.func @transform_0(%arg0: i32) -> (i32, i32) {
    %c0_i32 = arith.constant 0 : i32
    %c0_i32_0 = arith.constant 0 : i32
    return %arg0, %c0_i32 : i32, i32
  }
  func.func @transform_1(%arg0: i32) -> (i32, i32) {
    %c0_i32 = arith.constant 0 : i32
    %c0_i32_0 = arith.constant 0 : i32
    return %arg0, %c0_i32 : i32, i32
  }
  func.func @transform_2(%arg0: i32) -> (i32, i32) {
    %c0_i32 = arith.constant 0 : i32
    %c0_i32_0 = arith.constant 0 : i32
    return %arg0, %c0_i32 : i32, i32
  }
  func.func @transform_3(%arg0: i32) -> (i32, i32) {
    %c0_i32 = arith.constant 0 : i32
    %c0_i32_0 = arith.constant 0 : i32
    %c0_i32_1 = arith.constant 0 : i32
    return %c0_i32, %c0_i32_0 : i32, i32
  }
  func.func @transform_4(%arg0: i32) -> (i32, i32) {
    %c0_i32 = arith.constant 0 : i32
    %c0_i32_0 = arith.constant 0 : i32
    %c0_i32_1 = arith.constant 0 : i32
    return %c0_i32, %c0_i32_0 : i32, i32
  }
  func.func @transform_5(%arg0: i32) -> (i32, i32) {
    %c0_i32 = arith.constant 0 : i32
    %c0_i32_0 = arith.constant 0 : i32
    return %c0_i32, %arg0 : i32, i32
  }
  func.func @transform_6(%arg0: i32) -> (i32, i32, i32) {
    %c0_i32 = arith.constant 0 : i32
    %c0_i32_0 = arith.constant 0 : i32
    %c0_i32_1 = arith.constant 0 : i32
    return %arg0, %c0_i32, %c0_i32_0 : i32, i32, i32
  }
}

</mosaic_0001>

<bundles_post_ra>
// kernel: tpu_custom_call.1
= control target key start
LH: loop header
LB: loop body
LE: loop exit
PB: predicated region body
PF: predicated region fallthrough
CT: control target
= control target key end

     0   :  { %12 = vsyncpa [#allocation3], 0  ;;  %v737_v2 = vmov 0   ;;  %s958_s0 = inlined_call_operand.vmem [shape: f32[16,4], index: 0, kind: input, shape index: {}]   ;;  %s959_s1 = inlined_call_operand.vmem [shape: f32[16,4], index: 1, kind: input, shape index: {}]   ;;  %s960_s2 = inlined_call_operand.vmem [shape: f32[16,1], index: 2, kind: input, shape index: {}]   ;;  %s961_s3 = inlined_call_operand.vmem [shape: f32[3,16], index: 3, kind: input, shape index: {}]   ;;  %s962_s4 = inlined_call_operand.vmem [shape: f32[16,16], index: 4, kind: input, shape index: {}]   ;;  %s963_s5 = inlined_call_operand.hbm [shape: f32[8,16], index: 5, kind: output, shape index: {0}]   ;;  %s964_s6 = inlined_call_operand.hbm [shape: f32[1,8,128], index: 6, kind: output, shape index: {1}]  }
   0x1   :  { %v796_v0 = vld [vmem:[%s958_s0 + $0x8] sm:$0xff]  ;;  %v801_v1 = vld [vmem:[%s958_s0] sm:$0xff]  ;;  %673 = vset.pattern.permute.xlu1 %v737_v2  ;;  %671 = vset.pattern.permute.xlu0 %v737_v2 }
   0x2   :  { %42 = vperm.xlu1 %673, %v796_v0   ;;  %37 = vperm.xlu0 %671, %v801_v1  }
   0x3   :  { %13 = vsyncpa [#allocation5], 0  ;;  %v738_v3 = vmov 1   ;;  %v810_v4 = vld [vmem:[%s960_s2] sm:$0xff]  ;;  %v739_v5 = vmov 2   ;;  %v824_v8 = vld [vmem:[%s959_s1 + $0x8] sm:$0xff]  ;;  %v45_v14 = vlaneseq }
   0x4   :  { %v817_v6 = vld [vmem:[%s959_s1] sm:$0xff]  ;;  %v829_v9 = vld [vmem:[%s960_s2 + $0x8] sm:$0xff]  ;;  %s742_s12 = smov 12   ;;  %vm95_vm0 = vcmask 130048   ;;  %v275_v60 = vmul.f32 0.04, %v824_v8 }
   0x5   :  { %v33_v7 = vmul.f32 %v810_v4, %v817_v6  ;;  %v34_v10 = vmul.f32 %v829_v9, %v824_v8  ;;  %v31_v11 = vld [vmem:[%s962_s4] sm:$0xff]  ;;  %v32_v12 = vld [vmem:[%s962_s4 + $0x8] sm:$0xff]  ;;  %v46_v15 = vshrl.u32 %v45_v14, 7  ;;  %s741_s4 = smov 4   ;;  %v274_v57 = vmul.f32 0.04, %v817_v6 }
   0x6   :  { %674 = vset.pattern.permute.xlu1 %v738_v3  ;;  %672 = vset.pattern.permute.xlu0 %v738_v3  ;;  %v639_v13 = vpack.c.bf16 %v32_v12, %v31_v11  ;;  %v30_v18 = vld [vmem:[%s961_s3] sm:$0x7]  ;;  %s740_s3 = smov 8   ;;  %vm233_vm1 = vcmask 31744   ;;  %v743_v12 = vmov 3   ;;  %vm236_vm2 = vcmask 64512  }
   0x7   :  { %58 = vperm.xlu1 %674, %v796_v0   ;;  %54 = vperm.xlu0 %672, %v801_v1   ;;  %v63_v16 = vsub.s32 1, %v46_v15  ;;  %v47_v17 = vsub.s32 0, %v46_v15  ;;  %v81_v23 = vsub.s32 2, %v46_v15  ;;  %vm239_vm3 = vcmask 97280   ;;  %s744_s13 = smov 124   ;;  %s745_s14 = smov 125  }
   0x8   :  { %640 = vmatprep.subr.bf16.mxu0 %v639_v13  ;;  %s746_s15 = smov 118   ;;  %s747_s16 = smov 3   ;;  %vm751_vm4 = vmmov 0   ;;  %vm370_vm5 = vcmask 7168   ;;  %vm539_vm6 = vcmask 39936   ;;  %vm536_vm7 = vcmask 15360  }
   0x9   :  { %642 = vmatpush3.bf16.msra.mxu0 %v639_v13  ;;  %v64_v21 = vrot.slane %v30_v18, %v63_v16  ;;  %v48_v22 = vrot.slane %v30_v18, %v47_v17  ;;  %v82_v30 = vrot.slane %v30_v18, %v81_v23  ;;  %s750_s17 = smov 127   ;;  %s753_s18 = smov 116   ;;  %vm575_vm8 = vcmask 23552  }
   0xa   :  { %s754_s19 = smov 2   ;;  %s755_s20 = smov 5   ;;  %vm582_vm9 = vcmask 1042432   ;;  %vm584_vm10 = vcmask 1043456  }
   0xb   :  { %675 = vset.pattern.permute.xlu1 %v739_v5  ;;  %676 = vset.pattern.permute.xlu0 %v739_v5  ;;  %s756_s23 = smov [#allocation4]  }
   0xc   :  { %72 = vperm.xlu1 %675, %v801_v1   ;;  %76 = vperm.xlu0 %676, %v796_v0   ;;  %s603_s24 = sshll.u32 %s756_s23, 4  ;;  %s604_s24 = int_to_ptr.vmem [resolvable:$true] %s603_s24 }
   0xd   :  { %s689_s25 = scalar_lea.vmem %s604_s24, 128  ;;  %p694_p1 = scmp.lt.s32.totalorder %s604_s24, %s604_s24 }
   0xe   :  { %p690_p0 = scmp.ne.s32.totalorder %s604_s24, %s689_s25  ;;  %p695_p2 = scmp.lt.s32.totalorder %s689_s25, %s689_s25 }
  0x10   :  { %202 = vperm.xlu0 %676, %v817_v6   ;;  %677 = vset.pattern.permute.xlu1 %v737_v2  ;;  %p696_p3 = por %p695_p2, %p694_p1 }
  0x11   :  { %191 = vperm.xlu1 %677, %v33_v7  }
  0x12   :  { %p697_p4 = pnand %p696_p3, %p690_p0 }
  0x14   :  { %679 = vset.pattern.permute.xlu0 %v737_v2 }
  0x15   :  { %196 = vperm.xlu1 %677, %v34_v10   ;;  %179 = vperm.xlu0 %679, %v817_v6  }
  0x19   :  { %678 = vset.pattern.permute.xlu1 %v739_v5 }
  0x1a   :  { %206 = vperm.xlu1 %678, %v824_v8  }
  0x1e   :  { %680 = vset.pattern.permute.xlu1 %v737_v2 }
  0x1f   :  { %184 = vperm.xlu1 %680, %v824_v8  }
  0x81   :  { %v43_v19 = vpop.permute.xlu1 %42  ;;  %v38_v20 = vpop.permute.xlu0 %37 }
  0x82   :  { %v50_v28 = vsub.f32 %v43_v19, %v48_v22  ;;  %v49_v29 = vsub.f32 %v38_v20, %v48_v22 }
  0x84   :  { %v52_v35 = vmul.f32 %v50_v28, %v50_v28  ;;  %v51_v36 = vmul.f32 %v49_v29, %v49_v29 }
  0x86   :  { %v59_v24 = vpop.permute.xlu1 %58  ;;  %v55_v25 = vpop.permute.xlu0 %54 }
  0x87   :  { %v66_v26 = vsub.f32 %v59_v24, %v64_v21  ;;  %v65_v27 = vsub.f32 %v55_v25, %v64_v21 }
  0x89   :  { %v68_v31 = vmul.f32 %v66_v26, %v66_v26  ;;  %v67_v32 = vmul.f32 %v65_v27, %v65_v27 }
  0x8b   :  { %v73_v33 = vpop.permute.xlu1 %72  ;;  %v77_v34 = vpop.permute.xlu0 %76  ;;  %v70_v39 = vadd.f32 %v68_v31, %v52_v35  ;;  %v69_v40 = vadd.f32 %v67_v32, %v51_v36  ;;  %v244_v36 = vmul.f32 0.5, %v817_v6 }
  0x8c   :  { %v83_v37 = vsub.f32 %v73_v33, %v82_v30  ;;  %v84_v38 = vsub.f32 %v77_v34, %v82_v30 }
  0x8e   :  { %v85_v41 = vmul.f32 %v83_v37, %v83_v37  ;;  %v86_v42 = vmul.f32 %v84_v38, %v84_v38  ;;  %v245_v38 = vmul.f32 0.5, %v824_v8 }
  0x8f   :  { %v846_v43 = vpop.permute.xlu0 %202 }
  0x90   :  { %v87_v44 = vadd.f32 %v85_v41, %v69_v40  ;;  %v88_v45 = vadd.f32 %v86_v42, %v70_v39  ;;  %v209_v46 = vmul.f32 %v846_v43, %v801_v1  ;;  %v192_v47 = vpop.permute.xlu1 %191  ;;  %v748_v41 = vmov 0.0|0.0  }
  0x91   :  { %v199_v50 = vmul.f32 %v192_v47, %v801_v1  ;;  %643 = vmatprep.subr.bf16.mxu1 %v748_v41 }
  0x92   :  { %v89_v48 = vmul.f32 -0.04, %v87_v44  ;;  %v90_v49 = vmul.f32 -0.04, %v88_v45  ;;  %221 = vrot.lane.b32.xlu1 %v209_v46, %s740_s3  ;;  %v749_v44 = vmov 15  }
  0x94   :  { %v91_v51 = vmul.f32 1.442695, %v89_v48  ;;  %v93_v52 = vmul.f32 1.442695, %v90_v49  ;;  %v197_v53 = vpop.permute.xlu1 %196  ;;  %v180_v62 = vpop.permute.xlu0 %179 }
  0x95   :  { %v200_v56 = vmul.f32 %v197_v53, %v796_v0  ;;  %v187_v7 = vmul.f32 %v180_v62, %v801_v1 }
  0x96   :  { %685 = vpow2.f32 %v91_v51  ;;  %213 = vrot.lane.b32.xlu1 %v199_v50, %s741_s4 }
  0x97   :  { %687 = vpow2.f32 %v93_v52 }
  0x99   :  { %v852_v54 = vpop.permute.xlu1 %206 }
  0x9a   :  { %227 = vrot.lane.b32.xlu1 %v801_v1, %s742_s12  ;;  %v210_v55 = vmul.f32 %v852_v54, %v796_v0 }
  0x9c   :  { %223 = vrot.lane.b32.xlu0 %v210_v55, %s740_s3  ;;  %v752_v55 = vmov 0.0  }
  0x9d   :  { %636 = vmatprep.mubr.msk.f32.mxu1 %vm751_vm4, %v752_v55 }
  0x9e   :  { %278 = vperm.xlu1 %680, %v810_v4   ;;  %v185_v61 = vpop.permute.xlu1 %184 }
  0x9f   :  { %v188_v3 = vmul.f32 %v185_v61, %v796_v0 }
  0xa0   :  { %v686_v58 = vpop.eup %685  ;;  %215 = vrot.lane.b32.xlu0 %v200_v56, %s741_s4 }
  0xa1   :  { %v688_v59 = vpop.eup %687  ;;  %629 = vmatprep.mubr.msk.f32.mxu0 %vm95_vm0, %v686_v58 }
  0xa2   :  { %630 = vmatmul.mubr.msk.f32.vlgmr.msra.gmra.mrb[0].mxu0 %vm95_vm0, %v688_v59  ;;  %298 = vperm.xlu1 %680, %v274_v57  }
  0xa4   :  { %229 = vrot.lane.b32.xlu0 %v796_v0, %s742_s12 }
  0xa6   :  { %681 = vset.pattern.permute.xlu1 %v743_v12 }
  0xa8   :  { %283 = vperm.xlu0 %679, %v829_v9  }
  0xac   :  { %303 = vperm.xlu0 %679, %v275_v60  }
  0xb0   :  { %682 = vset.pattern.permute.xlu0 %v743_v12 }
 0x104   :  { %v222_v63 = vpop.permute.xlu1 %221 }
 0x108   :  { %v214_v5 = vpop.permute.xlu1 %213 }
 0x109   :  { %v234_v13 = vsel %vm233_vm1, %v187_v7, %v214_v5 }
 0x10a   :  { %v237_v19 = vsel %vm236_vm2, %v234_v13, %v222_v63 }
 0x10c   :  { %v228_v15 = vpop.permute.xlu1 %227 }
 0x10d   :  { %v240_v22 = vsel %vm239_vm3, %v237_v19, %v228_v15 }
 0x10e   :  { %v224_v2 = vpop.permute.xlu0 %223 }
 0x112   :  { %v216_v10 = vpop.permute.xlu0 %215 }
 0x113   :  { %v235_v11 = vsel %vm233_vm1, %v188_v3, %v216_v10 }
 0x114   :  { %v238_v14 = vsel %vm236_vm2, %v235_v11, %v224_v2 }
 0x116   :  { %v230_v16 = vpop.permute.xlu0 %229 }
 0x117   :  { %v241_v18 = vsel %vm239_vm3, %v238_v14, %v230_v16 }
 0x11d   :  { %v279_v25 = vpop.permute.xlu1 %278 }
 0x121   :  { %v299_v27 = vpop.permute.xlu1 %298 }
 0x127   :  { %v284_v24 = vpop.permute.xlu0 %283 }
 0x12b   :  { %v304_v26 = vpop.permute.xlu0 %303 }
 0x175   :  { %v631_v17 = vpop.f32.mrb[0].mxu0 }
 0x176   :  { %v868_v20 = vsub.f32 %v631_v17, %v241_v18  ;;  %v168_v21 = vpop.f32.mrb[1].mxu0 }
 0x177   :  { %v870_v23 = vsub.f32 %v168_v21, %v240_v22 }
 0x178   :  { %290 = vrot.lane.b32.xlu0 %v868_v20, %s744_s13  ;;  %v287_v28 = vmul.f32 %v284_v24, %v868_v20  ;;  %v323_v3 = vmul.f32 %v868_v20, %v852_v54 }
 0x179   :  { %288 = vrot.lane.b32.xlu1 %v870_v23, %s744_s13  ;;  %v286_v30 = vmul.f32 %v279_v25, %v870_v23  ;;  %v322_v2 = vmul.f32 %v870_v23, %v846_v43 }
 0x17c   :  { %250 = vrot.lane.b32.xlu0 %v868_v20, %s745_s14 }
 0x17d   :  { %248 = vrot.lane.b32.xlu1 %v870_v23, %s745_s14 }
 0x1ea   :  { %v291_v29 = vpop.permute.xlu0 %290 }
 0x1eb   :  { %v295_v31 = vadd.f32 %v291_v29, %v287_v28  ;;  %v289_v32 = vpop.permute.xlu1 %288 }
 0x1ec   :  { %v294_v33 = vadd.f32 %v289_v32, %v286_v30 }
 0x1ed   :  { %v307_v34 = vmul.f32 %v304_v26, %v295_v31 }
 0x1ee   :  { %v306_v35 = vmul.f32 %v299_v27, %v294_v33  ;;  %v251_v40 = vpop.permute.xlu0 %250 }
 0x1ef   :  { %v249_v37 = vpop.permute.xlu1 %248  ;;  %315 = vperm.xlu0 %682, %v307_v34   ;;  %v255_v42 = vmul.f32 %v251_v40, %v245_v38 }
 0x1f0   :  { %310 = vperm.xlu1 %681, %v306_v35   ;;  %v254_v39 = vmul.f32 %v249_v37, %v244_v36 }
 0x1f3   :  { %266 = vrot.lane.b32.xlu0 %v870_v23, %s746_s15 }
 0x1f4   :  { %258 = vrot.lane.b32.xlu1 %v254_v39, %s747_s16 }
 0x1f5   :  { %683 = vset.pattern.permute.xlu1 %v749_v44 }
 0x1f7   :  { %354 = vrot.lane.b32.xlu0 %v810_v4, %s747_s16 }
 0x1f8   :  { %260 = vrot.lane.b32.xlu1 %v255_v42, %s747_s16 }
 0x1fc   :  { %268 = vrot.lane.b32.xlu1 %v868_v20, %s746_s15 }
 0x200   :  { %356 = vrot.lane.b32.xlu1 %v829_v9, %s747_s16 }
 0x204   :  { %324 = vrot.lane.b32.xlu1 %v870_v23, %s741_s4 }
 0x208   :  { %326 = vrot.lane.b32.xlu1 %v868_v20, %s741_s4 }
 0x215   :  { %405 = vxpose.xlu0.b32.start [1/2] (short) (narrow) %v801_v1, 8 }
 0x219   :  { %406 = vxpose.xlu0.b32.end [2/2] (short) (narrow) %v796_v0, 8 }
 0x242   :  { %684 = vset.pattern.permute.xlu0 %v749_v44 }
 0x26e   :  { %v316_v45 = vpop.permute.xlu0 %315 }
 0x26f   :  { %v319_v4 = vmul.f32 %v316_v45, %v796_v0  ;;  %v311_v46 = vpop.permute.xlu1 %310 }
 0x270   :  { %v318_v47 = vmul.f32 %v311_v46, %v801_v1 }
 0x271   :  { %v894_v9 = vsub.f32 %v319_v4, %v307_v34 }
 0x272   :  { %v320_v48 = vsub.f32 %v318_v47, %v306_v35  ;;  %v267_v49 = vpop.permute.xlu0 %266 }
 0x273   :  { %v897_v50 = vadd.f32 %v267_v49, %v817_v6  ;;  %v259_v51 = vpop.permute.xlu1 %258 }
 0x274   :  { %v644_v52 = vpack.c.bf16 %v894_v9, %v320_v48  ;;  %v264_v59 = vadd.f32 %v259_v51, %v817_v6 }
 0x275   :  { %386 = vrot.lane.b32.xlu1 %v897_v50, %s750_s17 }
 0x276   :  { %645 = vmatpush3.bf16.msra.mxu1 %v644_v52  ;;  %v355_v61 = vpop.permute.xlu0 %354 }
 0x277   :  { %v261_v53 = vpop.permute.xlu1 %260  ;;  %v360_v63 = vmul.f32 %v355_v61, %v264_v59 }
 0x278   :  { %v265_v57 = vadd.f32 %v261_v53, %v824_v8 }
 0x27b   :  { %v269_v56 = vpop.permute.xlu1 %268 }
 0x27c   :  { %v910_v7 = vadd.f32 %v269_v56, %v824_v8 }
 0x27f   :  { %v357_v58 = vpop.permute.xlu1 %356 }
 0x280   :  { %v361_v60 = vmul.f32 %v357_v58, %v265_v57 }
 0x282   :  { %366 = vrot.lane.b32.xlu1 %v361_v60, %s745_s14 }
 0x283   :  { %v325_v62 = vpop.permute.xlu1 %324 }
 0x284   :  { %v330_v10 = vadd.f32 %v325_v62, %v322_v2 }
 0x286   :  { %364 = vrot.lane.b32.xlu1 %v360_v63, %s745_s14  ;;  %v332_v12 = vmul.f32 -0.08, %v330_v10 }
 0x287   :  { %v327_v5 = vpop.permute.xlu1 %326 }
 0x288   :  { %v331_v6 = vadd.f32 %v327_v5, %v323_v3 }
 0x28a   :  { %v333_v11 = vmul.f32 -0.08, %v331_v6  ;;  %388 = vrot.lane.b32.xlu1 %v910_v7, %s750_s17 }
 0x28c   :  { %348 = vrot.lane.b32.xlu0 %v333_v11, %s753_s18 }
 0x28e   :  { %336 = vperm.xlu1 %683, %v332_v12  }
 0x290   :  { %512 = vrot.lane.b32.xlu0 %v264_v59, %s745_s14 }
 0x292   :  { %341 = vperm.xlu1 %683, %v333_v11  }
 0x294   :  { %514 = vrot.lane.b32.xlu0 %v265_v57, %s745_s14 }
 0x295   :  { %v421_v43 = vpop.trf.xlu0 }
 0x296   :  { %346 = vrot.lane.b32.xlu1 %v332_v12, %s753_s18  ;;  %637 = vmatmul.mubr.msk.f32.vlgmr.msra.gmra.mrb[0].mxu1 %vm95_vm0, %v421_v43 }
 0x2e7   :  { %v387_v8 = vpop.permute.xlu1 %386 }
 0x2e8   :  { %v392_v18 = vsel %vm370_vm5, %v387_v8, 0.0 }
 0x2f4   :  { %v367_v54 = vpop.permute.xlu1 %366 }
 0x2f5   :  { %v372_v14 = vsel %vm370_vm5, %v367_v54, 0.0 }
 0x2f8   :  { %v365_v13 = vpop.permute.xlu1 %364 }
 0x2f9   :  { %v371_v15 = vsel %vm370_vm5, %v365_v13, 0.0 }
 0x2fa   :  { %v373_v16 = vadd.f32 %v372_v14, %v371_v15 }
 0x2fc   :  { %374 = vadd.xlane.f32.xlu1 %v373_v16  ;;  %v389_v17 = vpop.permute.xlu1 %388 }
 0x2fd   :  { %v393_v19 = vsel %vm370_vm5, %v389_v17, 0.0 }
 0x2fe   :  { %v394_v20 = vadd.f32 %v393_v19, %v392_v18  ;;  %v349_v27 = vpop.permute.xlu0 %348 }
 0x300   :  { %395 = vadd.xlane.f32.xlu1 %v394_v20 }
 0x302   :  { %v513_v31 = vpop.permute.xlu0 %512 }
 0x303   :  { %v534_v41 = vsel %vm370_vm5, %v513_v31, %v897_v50 }
 0x306   :  { %v515_v32 = vpop.permute.xlu0 %514 }
 0x307   :  { %v535_v49 = vsel %vm370_vm5, %v515_v32, %v910_v7 }
 0x30d   :  { %v337_v21 = vpop.permute.xlu1 %336 }
 0x30e   :  { %v344_v23 = vmul.f32 %v337_v21, %v801_v1 }
 0x311   :  { %520 = vrot.lane.b32.xlu1 %v320_v48, %s754_s19  ;;  %v342_v22 = vpop.permute.xlu1 %341 }
 0x312   :  { %v345_v26 = vmul.f32 %v342_v22, %v796_v0 }
 0x314   :  { %v353_v28 = vsub.f32 %v345_v26, %v349_v27 }
 0x315   :  { %v347_v24 = vpop.permute.xlu1 %346 }
 0x316   :  { %v352_v25 = vsub.f32 %v344_v23, %v347_v24 }
 0x318   :  { %528 = vrot.lane.b32.xlu0 %v352_v25, %s755_s20 }
 0x31c   :  { %522 = vrot.lane.b32.xlu0 %v894_v9, %s754_s19 }
 0x320   :  { %530 = vrot.lane.b32.xlu0 %v353_v28, %s755_s20 }
 0x369   :  { %v506_v29 = vpop.f32.mrb[0].mxu1 }
 0x36a   :  { %v638_v30 = vpop.f32.mrb[1].mxu1  ;;  %v576_v59 = vsel %vm575_vm8, %v506_v29, 0.0 }
 0x389   :  { %v375_v33 = vpop.xlane.xlu1 %374 }
 0x38a   :  { %v376_v34 = vrot.slane %v375_v33, 4  ;;  %v529_v35 = vpop.permute.xlu0 %528 }
 0x38c   :  { %v377_v36 = vadd.f32 %v376_v34, %v375_v33 }
 0x38d   :  { %v396_v1 = vpop.xlane.xlu1 %395 }
 0x38e   :  { %v378_v37 = vrot.slane %v377_v36, 2  ;;  %v397_v38 = vrot.slane %v396_v1, 4  ;;  %v523_v39 = vpop.permute.xlu0 %522 }
 0x38f   :  { %v538_v51 = vsel %vm536_vm7, %v535_v49, %v523_v39 }
 0x390   :  { %v398_v40 = vadd.f32 %v397_v38, %v396_v1  ;;  %v379_v0 = vadd.f32 %v378_v37, %v377_v36 }
 0x391   :  { %v521_v42 = vpop.permute.xlu1 %520 }
 0x392   :  { %v399_v44 = vrot.slane %v398_v40, 2  ;;  %v537_v45 = vsel %vm536_vm7, %v534_v41, %v521_v42  ;;  %v380_v4 = vrot.slane %v379_v0, 1  ;;  %v531_v47 = vpop.permute.xlu0 %530 }
 0x393   :  { %v540_v46 = vsel %vm539_vm6, %v537_v45, %v529_v35  ;;  %v541_v50 = vsel %vm539_vm6, %v538_v51, %v531_v47 }
 0x394   :  { %542 = vxpose.xlu1.b32.start [1/2] (short) (narrow) %v540_v46, 8  ;;  %v381_v9 = vadd.f32 %v380_v4, %v379_v0  ;;  %v400_v48 = vadd.f32 %v399_v44, %v398_v40 }
 0x396   :  { %646 = vpush %v381_v9  ;;  %v401_v52 = vrot.slane %v400_v48, 1 }
 0x398   :  { %543 = vxpose.xlu1.b32.end [2/2] (short) (narrow) %v541_v50, 8  ;;  %v402_v53 = vadd.f32 %v401_v52, %v400_v48 }
 0x39a   :  { %648 = vpush %v402_v53 }
 0x3c7   :  { %s647_s21 = spop %646 }
 0x3c8   :  { %v383_v55 = vstv %s647_s21 }
 0x3cb   :  { %s649_s22 = spop %648 }
 0x3cc   :  { %v404_v56 = vstv %s649_s22 }
 0x3cd   :  { %v577_v57 = vsel %vm370_vm5, %v383_v55, %v404_v56 }
 0x3ce   :  { %v578_v58 = vsel %vm536_vm7, %v577_v57, 0.0 }
 0x3cf   :  { %v580_v60 = vrot.slane %v578_v58, 5 }
 0x3d1   :  { %v583_v61 = vsel %vm582_vm9, %v576_v59, %v580_v60 }
 0x3d2   :  { %v585_v62 = vsel %vm584_vm10, %v583_v61, 0.0 }
 0x3d3   :  { %586 = vst [vmem:[#allocation4] sm:$0xff] %v585_v62 }
 0x3d4   :  { %700 = shalt.err (!%p697_p4)
}
 0x3d5   :  { %s701_s27 = scalar_lea.hbm %s964_s6, 128 }
 0x3d6   :  { %p702_p5 = scmp.ne.s32.totalorder %s964_s6, %s701_s27  ;;  %p705_p6 = scmp.lt.u32.totalorder %s701_s27, %s964_s6 }
 0x3d8   :  { %p707_p7 = pnand %p705_p6, %p702_p5 }
 0x3da   :  { %710 = shalt.err (!%p707_p7)
}
 0x3db   :  { %606 = dma.vmem_to_hbm [thread:$0]  %s604_s24, 128, %s964_s6, [#allocation5]  }
 0x3dc   :  { %s757_s2 = smov [#allocation2]  }
 0x3dd   :  { %s593_s9 = sshll.u32 %s757_s2, 4  ;;  %s594_s9 = int_to_ptr.vmem [resolvable:$true] %s593_s9 }
 0x3de   :  { %s711_s10 = scalar_lea.vmem %s594_s9, 128  ;;  %p716_p9 = scmp.lt.s32.totalorder %s594_s9, %s594_s9 }
 0x3df   :  { %p712_p8 = scmp.ne.s32.totalorder %s594_s9, %s711_s10  ;;  %p717_p10 = scmp.lt.s32.totalorder %s711_s10, %s711_s10 }
 0x3e1   :  { %p718_p11 = por %p717_p10, %p716_p9 }
 0x3e3   :  { %p719_p12 = pnand %p718_p11, %p712_p8 }
 0x414   :  { %v558_v63 = vpop.trf.xlu1 }
 0x415   :  { %574 = vst.msk [vmem:[#allocation2] sm:$0xff] %vm95_vm0, %v558_v63 }
 0x416   :  { %722 = shalt.err (!%p719_p12)
}
 0x417   :  { %s723_s4 = scalar_lea.hbm %s963_s5, 128 }
 0x418   :  { %p724_p13 = scmp.ne.s32.totalorder %s963_s5, %s723_s4  ;;  %p727_p0 = scmp.lt.u32.totalorder %s723_s4, %s963_s5 }
 0x41a   :  { %p729_p1 = pnand %p727_p0, %p724_p13 }
 0x41c   :  { %732 = shalt.err (!%p729_p1)
}
 0x41d   :  { %596 = dma.vmem_to_hbm [thread:$0]  %s594_s9, 128, %s963_s5, [#allocation3]  }
 0x41e   :  { %733 = dma.done.wait [#allocation3], 128  }
 0x41f   :  { %734 = vsyncadd [#allocation3], 4294967168 }
 0x420   :  { %735 = dma.done.wait [#allocation5], 128  }
 0x421   :  { %736 = vsyncadd [#allocation5], 4294967168 }
 0x422   :  { %613 = vsyncpa [#allocation3], 1 }
 0x423   :  { %614 = vsyncpa [#allocation5], 1 }

</bundles_post_ra>
